<compile_context>
chip_gen: v7x
topology: tpu7x:2x2x1
jax: 0.10.0
libtpu: 0.0.40
codegen_flags: <defaults>
</compile_context>

<pallas_src>
import jax
import jax.numpy as jnp
from jax import lax
from jax.experimental import pallas as pl
from jax.experimental.pallas import tpu as pltpu


def _round_up(a, m):
    return (a + m - 1) // m * m


def _downsample_kernel(p_ref, pm_ref, s_ref, b_ref, w_ref, e_ref, o_ref):
    """BN affine + ReLU + fused K=9*Cin matmul (+ padding correction).

    p_ref : (1, RT, Kp)  bf16  im2col patches (0 at conv zero-padding)
    pm_ref: (RT, 16)     f32   per-(row, tap) conv zero-padding indicator
    s_ref : (1, Kp)      f32   BN scale, tiled 9x along K
    b_ref : (1, Kp)      f32   BN shift, tiled 9x along K
    w_ref : (Kp, Cp)     bf16  conv weight reshaped to (9*Cin, Cout), padded
    e_ref : (16, Cp)     f32   per-tap padding-contribution rows
    o_ref : (1, RT, Cp)  f32
    """
    p = p_ref[0].astype(jnp.float32)                         # (RT, Kp)
    # BN affine + ReLU once per tile (broadcast hoisted; no per-tap loop).
    y = jnp.maximum(p * s_ref[...] + b_ref[...], 0.0)
    # Single fused MXU matmul, bf16 operands, f32 accumulation.
    acc = jnp.dot(y.astype(jnp.bfloat16), w_ref[...],
                  preferred_element_type=jnp.float32)         # (RT, Cp)
    # Conv zero-padding positions were stored as 0, so affine+ReLU produced
    # relu(shift) there instead of 0.  Their contribution is data independent;
    # subtract it with a tiny matmul instead of DMA-ing / building a (RT, K)
    # mask.
    corr = jnp.dot(pm_ref[...], e_ref[...],
                   preferred_element_type=jnp.float32)        # (RT, Cp)
    o_ref[0] = acc - corr


@jax.jit
def downsample_forward(x_nchw, weight_oihw, gamma, beta, eps=1e-5):
    N, Cin, H, W = x_nchw.shape
    Cout = weight_oihw.shape[0]
    Ho = (H + 2 - 3) // 2 + 1
    Wo = (W + 2 - 3) // 2 + 1
    R = Ho * Wo
    K = 9 * Cin
    K_pad = _round_up(K, 128)                 # lane-dense contraction dim
    Cout_p = _round_up(Cout, 128)             # lane-dense output dim

    # Row tile: as large as comfortably fits double-buffered in scoped VMEM
    # (sized conservatively for v7x's 64 MiB physical VMEM).
    r_tile = 512
    while r_tile > 16 and (2 * r_tile * (2 * K_pad + 4 * Cout_p)
                           + 4 * K_pad * Cout_p) > 20 * 1024 * 1024:
        r_tile //= 2
    R_TILE = min(r_tile, _round_up(R, 16))
    R_pad = _round_up(R, R_TILE)

    x = jnp.transpose(x_nchw, (0, 2, 3, 1)).astype(jnp.float32)      # NHWC

    # Training-mode BatchNorm statistics (biased variance over N,H,W) folded
    # into per-channel scale/shift (C-sized glue).
    mean = jnp.mean(x, axis=(0, 1, 2))
    var = jnp.var(x, axis=(0, 1, 2))
    inv = gamma.astype(jnp.float32) / jnp.sqrt(var + eps)
    scale_c = inv                                                    # (Cin,)
    shift_c = beta.astype(jnp.float32) - mean * inv                  # (Cin,)

    # im2col of the raw input directly in the fused (rows, 9*Cin) layout,
    # stored in bf16 (stride-2 decimation + bf16 keeps kernel reads ~1.1x the
    # f32 input bytes).
    x_pad = jnp.pad(x, ((0, 0), (1, 1), (1, 1), (0, 0)))
    taps = []
    for kh in range(3):
        for kw in range(3):
            taps.append(x_pad[:, kh:kh + 2 * Ho:2, kw:kw + 2 * Wo:2, :])
    patches = jnp.concatenate(taps, axis=-1).astype(jnp.bfloat16)    # (N,Ho,Wo,9Cin)
    patches = patches.reshape(N, R, K)
    patches = jnp.pad(patches, ((0, 0), (0, R_pad - R), (0, K_pad - K)))

    # BN scale/shift tiled 9x along the fused K axis.
    scale_k = jnp.tile(scale_c, 9)
    shift_k = jnp.tile(shift_c, 9)
    scale_kp = jnp.pad(scale_k, (0, K_pad - K)).reshape(1, K_pad)
    shift_kp = jnp.pad(shift_k, (0, K_pad - K)).reshape(1, K_pad)

    # Conv weight: (Cout,Cin,3,3) -> (kh,kw,Cin,Cout) -> (9*Cin, Cout), bf16,
    # zero-padded lane-dense.
    w = jnp.transpose(weight_oihw.astype(jnp.float32), (2, 3, 1, 0))
    w = w.reshape(K, Cout).astype(jnp.bfloat16)
    w_p = jnp.pad(w, ((0, K_pad - K), (0, Cout_p - Cout)))

    # Padding correction table E[t,:] = sum_c bf16(relu(shift_c)) * bf16(W[t,c,:]),
    # built from the exact bf16 operands the MXU multiplies, so the in-kernel
    # subtraction cancels the spurious padding contribution (up to f32
    # accumulation order).
    ypad = jnp.maximum(shift_k, 0.0).astype(jnp.bfloat16).astype(jnp.float32)
    e9 = (ypad.reshape(9, Cin, 1)
          * w.astype(jnp.float32).reshape(9, Cin, Cout)).sum(axis=1)  # (9,Cout)
    e_p = jnp.pad(e9, ((0, 16 - 9), (0, Cout_p - Cout)))

    # Per-(output pixel, tap) indicator of conv zero-padding positions.
    ho = jnp.arange(Ho)[:, None]
    wo = jnp.arange(Wo)[None, :]
    pm = []
    for kh in range(3):
        for kw in range(3):
            row_pad = (2 * ho + kh < 1) | (2 * ho + kh > H)
            col_pad = (2 * wo + kw < 1) | (2 * wo + kw > W)
            pm.append((row_pad | col_pad).astype(jnp.float32))        # (Ho,Wo)
    padmask = jnp.stack(pm, axis=-1).reshape(R, 9)
    padmask = jnp.pad(padmask, ((0, R_pad - R), (0, 16 - 9)))

    out = pl.pallas_call(
        _downsample_kernel,
        out_shape=jax.ShapeDtypeStruct((N, R_pad, Cout_p), jnp.float32),
        grid=(N, R_pad // R_TILE),
        in_specs=[
            pl.BlockSpec((1, R_TILE, K_pad), lambda n, r: (n, r, 0)),
            pl.BlockSpec((R_TILE, 16), lambda n, r: (r, 0)),
            pl.BlockSpec((1, K_pad), lambda n, r: (0, 0)),
            pl.BlockSpec((1, K_pad), lambda n, r: (0, 0)),
            pl.BlockSpec((K_pad, Cout_p), lambda n, r: (0, 0)),   # resident
            pl.BlockSpec((16, Cout_p), lambda n, r: (0, 0)),      # resident
        ],
        out_specs=pl.BlockSpec((1, R_TILE, Cout_p), lambda n, r: (n, r, 0)),
        compiler_params=pltpu.CompilerParams(
            dimension_semantics=("parallel", "parallel"),
            vmem_limit_bytes=32 * 1024 * 1024),
    )(patches, padmask, scale_kp, shift_kp, w_p, e_p)

    out = out[:, :R, :Cout].reshape(N, Ho, Wo, Cout)
    return jnp.transpose(out, (0, 3, 1, 2))                           # NCHW


def _reference(x_nchw, weight_oihw, gamma, beta, eps=1e-5):
    """Pure-JAX reference mirroring the PyTorch forward (training-mode BN)."""
    x = x_nchw.astype(jnp.float32)
    mean = x.mean(axis=(0, 2, 3), keepdims=True)
    var = x.var(axis=(0, 2, 3), keepdims=True)
    y = (x - mean) / jnp.sqrt(var + eps) * gamma.reshape(1, -1, 1, 1) \
        + beta.reshape(1, -1, 1, 1)
    y = jnp.maximum(y, 0.0)
    return lax.conv_general_dilated(
        y, weight_oihw.astype(jnp.float32),
        window_strides=(2, 2), padding=((1, 1), (1, 1)),
        dimension_numbers=("NCHW", "OIHW", "NCHW"))


if __name__ == "__main__":
    N, Cin, Cout, H, W = 2, 4, 8, 16, 16

    key = jax.random.PRNGKey(0)
    kx, kw, kg, kb = jax.random.split(key, 4)
    x = jax.random.normal(kx, (N, Cin, H, W), jnp.float32)
    weight = 0.1 * jax.random.normal(kw, (Cout, Cin, 3, 3), jnp.float32)
    gamma = 1.0 + 0.1 * jax.random.normal(kg, (Cin,), jnp.float32)
    beta = 0.1 * jax.random.normal(kb, (Cin,), jnp.float32)

    out = jax.block_until_ready(downsample_forward(x, weight, gamma, beta))
    ref = jax.block_until_ready(_reference(x, weight, gamma, beta))

    assert out.shape == (N, Cout, H // 2, W // 2), out.shape
    # bf16 MXU operands (per perf review) -> looser tolerance than pure f32.
    assert jnp.allclose(out, ref, atol=5e-2, rtol=5e-2), \
        float(jnp.max(jnp.abs(out - ref)))

    print("KERNEL_OK")
</pallas_src>

<mosaic_0001>
module attributes {stable_mosaic.version = 11 : i64} {
  func.func @_downsample_kernel(%arg0: i32, %arg1: i32, %arg2: memref<1x64x128xbf16, #tpu.memory_space<vmem>>, %arg3: memref<64x16xf32, #tpu.memory_space<vmem>>, %arg4: memref<1x128xf32, #tpu.memory_space<vmem>>, %arg5: memref<1x128xf32, #tpu.memory_space<vmem>>, %arg6: memref<128x128xbf16, #tpu.memory_space<vmem>>, %arg7: memref<16x128xf32, #tpu.memory_space<vmem>>, %arg8: memref<1x64x128xf32, #tpu.memory_space<vmem>>) attributes {dimension_semantics = [#tpu.dimension_semantics<parallel>, #tpu.dimension_semantics<parallel>], iteration_bounds = array<i64: 2, 1>, scalar_prefetch = 0 : i64, scratch_operands = 0 : i64, tpu.core_type = #tpu.core_type<tc>, window_params = [{transform_indices = @transform_0, window_bounds = array<i64: 1, 64, 128>}, {transform_indices = @transform_1, window_bounds = array<i64: 64, 16>}, {pipeline_mode = #tpu.pipeline_mode<synchronous>, transform_indices = @transform_2, window_bounds = array<i64: 1, 128>}, {pipeline_mode = #tpu.pipeline_mode<synchronous>, transform_indices = @transform_3, window_bounds = array<i64: 1, 128>}, {pipeline_mode = #tpu.pipeline_mode<synchronous>, transform_indices = @transform_4, window_bounds = array<i64: 128, 128>}, {pipeline_mode = #tpu.pipeline_mode<synchronous>, transform_indices = @transform_5, window_bounds = array<i64: 16, 128>}, {transform_indices = @transform_6, window_bounds = array<i64: 1, 64, 128>}]} {
    %c0 = arith.constant 0 : index
    %c0_0 = arith.constant 0 : index
    %c0_1 = arith.constant 0 : index
    %0 = vector.load %arg2[%c0, %c0_0, %c0_1] : memref<1x64x128xbf16, #tpu.memory_space<vmem>>, vector<1x64x128xbf16>
    %1 = vector.shape_cast %0 : vector<1x64x128xbf16> to vector<64x128xbf16>
    %2 = arith.extf %1 : vector<64x128xbf16> to vector<64x128xf32>
    %c0_2 = arith.constant 0 : index
    %c0_3 = arith.constant 0 : index
    %3 = vector.load %arg4[%c0_2, %c0_3] : memref<1x128xf32, #tpu.memory_space<vmem>>, vector<1x128xf32>
    %4 = vector.broadcast %3 : vector<1x128xf32> to vector<64x128xf32>
    %5 = arith.mulf %2, %4 : vector<64x128xf32>
    %c0_4 = arith.constant 0 : index
    %c0_5 = arith.constant 0 : index
    %6 = vector.load %arg5[%c0_4, %c0_5] : memref<1x128xf32, #tpu.memory_space<vmem>>, vector<1x128xf32>
    %7 = vector.broadcast %6 : vector<1x128xf32> to vector<64x128xf32>
    %8 = arith.addf %5, %7 : vector<64x128xf32>
    %cst = arith.constant 0.000000e+00 : f32
    %9 = vector.broadcast %cst : f32 to vector<64x128xf32>
    %10 = arith.maximumf %8, %9 : vector<64x128xf32>
    %11 = arith.truncf %10 : vector<64x128xf32> to vector<64x128xbf16>
    %c0_6 = arith.constant 0 : index
    %c0_7 = arith.constant 0 : index
    %12 = vector.load %arg6[%c0_6, %c0_7] : memref<128x128xbf16, #tpu.memory_space<vmem>>, vector<128x128xbf16>
    %cst_8 = arith.constant dense<0.000000e+00> : vector<64x128xf32>
    %13 = tpu.matmul %11, %12, %cst_8 {dimension_numbers = #tpu.dot_dimension_numbers<[1], [0], [0], [1], [0, 0, 1, 1], [], []>} : vector<64x128xbf16>, vector<128x128xbf16>, vector<64x128xf32> -> vector<64x128xf32>
    %c0_9 = arith.constant 0 : index
    %c0_10 = arith.constant 0 : index
    %14 = vector.load %arg3[%c0_9, %c0_10] : memref<64x16xf32, #tpu.memory_space<vmem>>, vector<64x16xf32>
    %c0_11 = arith.constant 0 : index
    %c0_12 = arith.constant 0 : index
    %15 = vector.load %arg7[%c0_11, %c0_12] : memref<16x128xf32, #tpu.memory_space<vmem>>, vector<16x128xf32>
    %cst_13 = arith.constant dense<0.000000e+00> : vector<64x128xf32>
    %16 = tpu.matmul %14, %15, %cst_13 {dimension_numbers = #tpu.dot_dimension_numbers<[1], [0], [0], [1], [0, 0, 1, 1], [], []>} : vector<64x16xf32>, vector<16x128xf32>, vector<64x128xf32> -> vector<64x128xf32>
    %17 = arith.subf %13, %16 : vector<64x128xf32>
    %c0_14 = arith.constant 0 : index
    %c0_15 = arith.constant 0 : index
    %c0_16 = arith.constant 0 : index
    %18 = vector.load %arg8[%c0_14, %c0_15, %c0_16] : memref<1x64x128xf32, #tpu.memory_space<vmem>>, vector<1x64x128xf32>
    %19 = vector.shape_cast %18 : vector<1x64x128xf32> to vector<64x128xf32>
    %20 = vector.shape_cast %17 : vector<64x128xf32> to vector<1x64x128xf32>
    tpu.vector_store %arg8[%c0_14, %c0_15, %c0_16], %20 {strides = array<i32>} : memref<1x64x128xf32, #tpu.memory_space<vmem>>, vector<1x64x128xf32>,
    return
  }
  func.func @transform_0(%arg0: i32, %arg1: i32) -> (i32, i32, i32) {
    %c0_i32 = arith.constant 0 : i32
    %c0_i32_0 = arith.constant 0 : i32
    return %arg0, %arg1, %c0_i32 : i32, i32, i32
  }
  func.func @transform_1(%arg0: i32, %arg1: i32) -> (i32, i32) {
    %c0_i32 = arith.constant 0 : i32
    %c0_i32_0 = arith.constant 0 : i32
    return %arg1, %c0_i32 : i32, i32
  }
  func.func @transform_2(%arg0: i32, %arg1: i32) -> (i32, i32) {
    %c0_i32 = arith.constant 0 : i32
    %c0_i32_0 = arith.constant 0 : i32
    %c0_i32_1 = arith.constant 0 : i32
    return %c0_i32, %c0_i32_0 : i32, i32
  }
  func.func @transform_3(%arg0: i32, %arg1: i32) -> (i32, i32) {
    %c0_i32 = arith.constant 0 : i32
    %c0_i32_0 = arith.constant 0 : i32
    %c0_i32_1 = arith.constant 0 : i32
    return %c0_i32, %c0_i32_0 : i32, i32
  }
  func.func @transform_4(%arg0: i32, %arg1: i32) -> (i32, i32) {
    %c0_i32 = arith.constant 0 : i32
    %c0_i32_0 = arith.constant 0 : i32
    %c0_i32_1 = arith.constant 0 : i32
    return %c0_i32, %c0_i32_0 : i32, i32
  }
  func.func @transform_5(%arg0: i32, %arg1: i32) -> (i32, i32) {
    %c0_i32 = arith.constant 0 : i32
    %c0_i32_0 = arith.constant 0 : i32
    %c0_i32_1 = arith.constant 0 : i32
    return %c0_i32, %c0_i32_0 : i32, i32
  }
  func.func @transform_6(%arg0: i32, %arg1: i32) -> (i32, i32, i32) {
    %c0_i32 = arith.constant 0 : i32
    %c0_i32_0 = arith.constant 0 : i32
    return %arg0, %arg1, %c0_i32 : i32, i32, i32
  }
}

</mosaic_0001>

<bundles_post_ra>
// kernel: tile.18
= control target key start
LH: loop header
LB: loop body
LE: loop exit
PB: predicated region body
PF: predicated region fallthrough
CT: control target
= control target key end

     0   :  { %s28_s0 = inlined_call_operand.vmem [shape: f32[4], index: 0, kind: input, shape index: {}]   ;;  %s29_s1 = inlined_call_operand.vmem [shape: f32[9,4], index: 1, kind: output, shape index: {}]  }
   0x1   :  { %v4_v0 = vld [vmem:[%s28_s0] ss:$0 sm:$0xff] }
   0x2   :  { %5 = vst [vmem:[%s29_s1] sm:$0xff] %v4_v0  ;;  %8 = vst [vmem:[%s29_s1 + $0x8] sm:$0xff] %v4_v0 }

// kernel: tile.19
= control target key start
LH: loop header
LB: loop body
LE: loop exit
PB: predicated region body
PF: predicated region fallthrough
CT: control target
= control target key end

     0   :  { %s75_s10 = smov 32   ;;  %s76_s11 = smov 24   ;;  %vm3_vm0 = vcmask 31744   ;;  %vm9_vm1 = vcmask 294144   ;;  %vm15_vm2 = vcmask 261344   ;;  %vm21_vm3 = vcmask 228544   ;;  %s123_s0 = inlined_call_operand.vmem [shape: f32[9,4], index: 0, kind: input, shape index: {}]   ;;  %s124_s1 = inlined_call_operand.vmem [shape: f32[36], index: 1, kind: output, shape index: {}]  }
   0x1   :  { %v59_v0 = vld [vmem:[%s123_s0 + $0x8] sm:$0x1]   ;;  %v61_v1 = vld [vmem:[%s123_s0 + $0x6] sm:$0x1]   ;;  %v60_v2 = vld [vmem:[%s123_s0 + $0x7] sm:$0x1]  }
   0x2   :  { %7 = vrot.lane.b32.xlu0 %v59_v0, %s75_s10  ;;  %19 = vrot.lane.b32.xlu1 %v61_v1, %s76_s11  ;;  %v62_v3 = vld [vmem:[%s123_s0 + $0x5] sm:$0x1]   ;;  %v2_v4 = vld [vmem:[%s123_s0] sm:$0x1]   ;;  %s77_s18 = smov 28   ;;  %s78_s19 = smov 20  }
   0x3   :  { %4 = vst.msk [vmem:[#allocation0] sm:$0x1] %vm3_vm0, %v2_v4   ;;  %v63_v5 = vld [vmem:[%s123_s0 + $0x4] sm:$0x1]   ;;  %v64_v6 = vld [vmem:[%s123_s0 + $0x3] sm:$0x1]  }
   0x4   :  { %s79_s24 = smov 16   ;;  %s80_s25 = smov 12   ;;  %v65_v7 = vld [vmem:[%s123_s0 + $0x2] sm:$0x1]   ;;  %v66_v8 = vld [vmem:[%s123_s0 + $0x1] sm:$0x1]  }
   0x5   :  { %s81_s0 = smov 8   ;;  %s82_s30 = smov 4   ;;  %vm27_vm4 = vcmask 195744   ;;  %vm33_vm5 = vcmask 162944   ;;  %vm39_vm6 = vcmask 130144   ;;  %vm45_vm7 = vcmask 97344  }
   0x6   :  { %13 = vrot.lane.b32.xlu0 %v60_v2, %s77_s18  ;;  %25 = vrot.lane.b32.xlu1 %v62_v3, %s78_s19  ;;  %vm51_vm8 = vcmask 64544  }
   0xa   :  { %31 = vrot.lane.b32.xlu0 %v63_v5, %s79_s24  ;;  %37 = vrot.lane.b32.xlu1 %v64_v6, %s80_s25 }
   0xe   :  { %43 = vrot.lane.b32.xlu0 %v65_v7, %s81_s0  ;;  %49 = vrot.lane.b32.xlu1 %v66_v8, %s82_s30 }
  0x74   :  { %v8_v9 = vpop.permute.xlu0 %7   ;;  %v20_v10 = vpop.permute.xlu1 %19  }
  0x75   :  { %10 = vst.msk [vmem:[#allocation0] sm:$0x1] %vm9_vm1, %v8_v9  }
  0x78   :  { %v14_v11 = vpop.permute.xlu0 %13   ;;  %v26_v12 = vpop.permute.xlu1 %25  }
  0x79   :  { %16 = vst.msk [vmem:[#allocation0] sm:$0x1] %vm15_vm2, %v14_v11  }
  0x7a   :  { %22 = vst.msk [vmem:[#allocation0] sm:$0x1] %vm21_vm3, %v20_v10  }
  0x7b   :  { %28 = vst.msk [vmem:[#allocation0] sm:$0x1] %vm27_vm4, %v26_v12  }
  0x7c   :  { %v32_v13 = vpop.permute.xlu0 %31   ;;  %v38_v14 = vpop.permute.xlu1 %37  }
  0x7d   :  { %34 = vst.msk [vmem:[#allocation0] sm:$0x1] %vm33_vm5, %v32_v13  }
  0x7e   :  { %40 = vst.msk [vmem:[#allocation0] sm:$0x1] %vm39_vm6, %v38_v14  }
  0x80   :  { %v44_v15 = vpop.permute.xlu0 %43   ;;  %v50_v16 = vpop.permute.xlu1 %49  }
  0x81   :  { %46 = vst.msk [vmem:[#allocation0] sm:$0x1] %vm45_vm7, %v44_v15  }
  0x82   :  { %52 = vst.msk [vmem:[#allocation0] sm:$0x1] %vm51_vm8, %v50_v16  }
  0x89   :  { %v56_v17 = vld [vmem:[#allocation0] sm:$0x1] }
  0x8a   :  { %58 = vst [vmem:[%s124_s1] sm:$0x1] %v56_v17 }

// kernel: downsample_forward.1
= control target key start
LH: loop header
LB: loop body
LE: loop exit
PB: predicated region body
PF: predicated region fallthrough
CT: control target
= control target key end

     0   :  { %s967_s21 = smov 0   ;;  %s969_s22 = smov 0   ;;  %s1078_s0 = inlined_call_operand.vmem [shape: bf16[2,64,128], index: 0, kind: input, shape index: {}]   ;;  %s1079_s1 = inlined_call_operand.vmem [shape: f32[64,16], index: 1, kind: input, shape index: {}]   ;;  %s1080_s2 = inlined_call_operand.vmem [shape: f32[1,128], index: 2, kind: input, shape index: {}]   ;;  %s1081_s3 = inlined_call_operand.vmem [shape: f32[1,128], index: 3, kind: input, shape index: {}]   ;;  %s1082_s4 = inlined_call_operand.vmem [shape: bf16[128,128], index: 4, kind: input, shape index: {}]   ;;  %s1083_s5 = inlined_call_operand.vmem [shape: f32[16,128], index: 5, kind: input, shape index: {}]   ;;  %s1084_s6 = inlined_call_operand.vmem [shape: f32[2,64,128], index: 6, kind: output, shape index: {}]  }
   0x1   :  { %s971_s23 = smov 0  }
   0x2 LB: > { %s28_s24 = sadd.s32 1, %s926_s22  ;;  %p764_p0 = scmp.ge.s32.totalorder %s930_s23, 1  ;;  %s930_s23 = sphi %s971_s23, %s16_s23   ;;  %s926_s22 = sphi %s969_s22, %s1086_s22   ;;  %s922_s21 = sphi %s967_s21, %s1085_s21  }
   0x3   : > { %p30_p1 = scmp.ge.s32.totalorder %s28_s24, 2  ;;  %p244_p2 = scmp.lt.s32.totalorder %s930_s23, 3 }
   0x5   : > { %s1088_s24 = smov (%p30_p1, %s28_s24), 0  ;;  %p245_p3 = pnand %p764_p0, %p244_p2 }
   0x6   : > { %v900_v0 = vld [vmem:[%s1082_s4] sm:$0xff] (!%p245_p3)   ;;  %v901_v1 = vld [vmem:[%s1082_s4 + $0x8] sm:$0xff] (!%p245_p3)   ;;  %p288_p4 = scmp.lt.s32.totalorder (!%p245_p3), %s922_s21, 1  ;;  %v902_v2 = vld [vmem:[%s1082_s4 + $0x10] sm:$0xff] (!%p245_p3)   ;;  %vm511_vm0 = vcmask (!%p245_p3), 130048  }
   0x7   : > { %248 = sbr.rel (%p245_p3) target bundleno = 265 (0x109), region = 44  ;;  %832 = vmatprep.subr.bf16.mxu0 (!%p245_p3), %v900_v0  ;;  %v509_v3 = vld [vmem:[%s1083_s5] sm:$0xff] (!%p245_p3)  ;;  %v510_v4 = vld [vmem:[%s1083_s5 + $0x8] sm:$0xff] (!%p245_p3)  ;;  %v903_v7 = vld [vmem:[%s1082_s4 + $0x18] sm:$0xff] (!%p245_p3)  }
   0x8   : > { %833 = vmatpush3.bf16.msra.mxu0 (!%p245_p3), %v900_v0  ;;  %v872_v5 = vpack.c.bf16 (!%p245_p3), %v510_v4, %v509_v3  ;;  %v501_v6 = vld [vmem:[%s1079_s1] sm:$0xff] (!%p245_p3)  ;;  %v502_v9 = vld [vmem:[%s1079_s1 + $0x8] sm:$0xff] (!%p245_p3)  ;;  %v503_v13 = vld [vmem:[%s1079_s1 + $0x10] sm:$0xff] (!%p245_p3) }
   0x9   : > { %834 = vmatprep.subr.bf16.mxu0 (!%p245_p3), %v901_v1  ;;  %860 = vmatprep.mubr.msk.f32.mxu1 (!%p245_p3), %vm511_vm0, %v501_v6  ;;  %v769_v12 = vld [vmem:[%s1080_s2] ss:$0 sm:$0xff] (!%p245_p3)  ;;  %v504_v22 = vld [vmem:[%s1079_s1 + $0x18] sm:$0xff] (!%p245_p3)  ;;  %v905_v28 = vld [vmem:[%s1082_s4 + $0x28] sm:$0xff] (!%p245_p3)  }
   0xa   : > { %873 = vmatprep.subr.bf16.mxu1 (!%p245_p3), %v872_v5  ;;  %v770_v14 = vld [vmem:[%s1081_s3] ss:$0 sm:$0xff] (!%p245_p3)  ;;  %v506_v34 = vld [vmem:[%s1079_s1 + $0x28] sm:$0xff] (!%p245_p3)  ;;  %v507_v35 = vld [vmem:[%s1079_s1 + $0x30] sm:$0xff] (!%p245_p3) }
   0xb   : > { %875 = vmatpush3.bf16.msra.mxu1 (!%p245_p3), %v872_v5  ;;  %v904_v16 = vld [vmem:[%s1082_s4 + $0x20] sm:$0xff] (!%p245_p3)   ;;  %v906_v39 = vld [vmem:[%s1082_s4 + $0x30] sm:$0xff] (!%p245_p3)   ;;  %v508_v42 = vld [vmem:[%s1079_s1 + $0x38] sm:$0xff] (!%p245_p3) }
   0xc   : > { %835 = vmatpush3.bf16.msra.mxu0 (!%p245_p3), %v901_v1  ;;  %v505_v25 = vld [vmem:[%s1079_s1 + $0x20] sm:$0xff] (!%p245_p3)  ;;  %v907_v47 = vld [vmem:[%s1082_s4 + $0x38] sm:$0xff] (!%p245_p3)  }
   0xd   : > { %836 = vmatprep.subr.bf16.mxu0 (!%p245_p3), %v902_v2 }
   0xe   : > { %s1090_s21 = smov (!%p288_p4, %s922_s21), 1  ;;  %861 = vmatmul.mubr.msk.f32.vlgmr.msra.gmra.mrb[0].mxu1 %vm511_vm0, %v502_v9 }
   0xf   : > { %s789_s7 = sshll.u32 %s1090_s21, 5  ;;  %863 = vmatprep.mubr.msk.f32.mxu1 %vm511_vm0, %v503_v13  ;;  %s790_s29 = sshll.u32 %s1090_s21, 6 }
  0x10   : > { %s1006_s14 = scalar_lea.vmem %s1078_s0, %s789_s7  ;;  %837 = vmatpush3.bf16.msra.mxu0 %v902_v2  ;;  %s311_s8 = scalar_lea.vmem %s1084_s6, %s790_s29 }
  0x11   : > { %v792_v8 = vld [vmem:[%s1006_s14] sm:$0xff]   ;;  %v807_v15 = vld [vmem:[%s1006_s14 + $0x8] sm:$0xff]   ;;  %838 = vmatprep.subr.bf16.mxu0 %v903_v7  ;;  %v808_v19 = vld [vmem:[%s1006_s14 + $0x10] sm:$0xff]  }
  0x12   : > { %v793_v10 = vunpack.c.l.bf16 %v792_v8  ;;  %v794_v11 = vunpack.c.h.bf16 %v792_v8  ;;  %v797_v23 = vunpack.c.l.bf16 %v807_v15  ;;  %v798_v24 = vunpack.c.h.bf16 %v807_v15  ;;  %864 = vmatmul.mubr.msk.f32.gmra.mrb[2].mxu1 %vm511_vm0, %v504_v22  ;;  %v809_v38 = vld [vmem:[%s1006_s14 + $0x18] sm:$0xff]  }
  0x13   : > { %v801_v26 = vunpack.c.l.bf16 %v808_v19  ;;  %v802_v27 = vunpack.c.h.bf16 %v808_v19  ;;  %866 = vmatprep.mubr.msk.f32.mxu1 %vm511_vm0, %v505_v25  ;;  %v805_v43 = vunpack.c.l.bf16 %v809_v38  ;;  %v806_v44 = vunpack.c.h.bf16 %v809_v38 }
  0x14   : > { %v337_v17 = vmul.f32 %v793_v10, %v769_v12  ;;  %v338_v18 = vmul.f32 %v794_v11, %v769_v12  ;;  %839 = vmatpush3.bf16.msra.mxu0 %v903_v7  ;;  %v339_v32 = vmul.f32 %v797_v23, %v769_v12  ;;  %v340_v33 = vmul.f32 %v798_v24, %v769_v12 }
  0x15   : > { %840 = vmatprep.subr.bf16.mxu0 %v904_v16  ;;  %v341_v36 = vmul.f32 %v801_v26, %v769_v12  ;;  %v342_v37 = vmul.f32 %v802_v27, %v769_v12  ;;  %v343_v50 = vmul.f32 %v805_v43, %v769_v12  ;;  %v344_v51 = vmul.f32 %v806_v44, %v769_v12 }
  0x16   : > { %v352_v20 = vadd.f32 %v770_v14, %v337_v17  ;;  %v353_v21 = vadd.f32 %v770_v14, %v338_v18  ;;  %867 = vmatmul.mubr.msk.f32.gmra.mrb[4].mxu1 %vm511_vm0, %v506_v34  ;;  %v354_v40 = vadd.f32 %v770_v14, %v339_v32  ;;  %v355_v41 = vadd.f32 %v770_v14, %v340_v33 }
  0x17   : > { %869 = vmatprep.mubr.msk.f32.mxu1 %vm511_vm0, %v507_v35  ;;  %v356_v45 = vadd.f32 %v770_v14, %v341_v36  ;;  %v357_v46 = vadd.f32 %v770_v14, %v342_v37  ;;  %v358_v55 = vadd.f32 %v770_v14, %v343_v50  ;;  %v359_v56 = vadd.f32 %v770_v14, %v344_v51 }
  0x18   : > { %v360_v29 = vmax.f32 %v352_v20, 0.0  ;;  %v361_v30 = vmax.f32 %v353_v21, 0.0  ;;  %841 = vmatpush3.bf16.msra.mxu0 %v904_v16  ;;  %v362_v48 = vmax.f32 %v354_v40, 0.0  ;;  %v363_v49 = vmax.f32 %v355_v41, 0.0 }
  0x19   : > { %842 = vmatprep.subr.bf16.mxu0 %v905_v28  ;;  %v364_v52 = vmax.f32 %v356_v45, 0.0  ;;  %v365_v53 = vmax.f32 %v357_v46, 0.0  ;;  %v366_v58 = vmax.f32 %v358_v55, 0.0  ;;  %v367_v59 = vmax.f32 %v359_v56, 0.0 }
  0x1a   : > { %v368_v31 = vpack.c.bf16 %v361_v30, %v360_v29  ;;  %870 = vmatmul.mubr.msk.f32.gmra.mrb[6].mxu1 %vm511_vm0, %v508_v42  ;;  %v369_v54 = vpack.c.bf16 %v363_v49, %v362_v48 }
  0x1b   : > { %v370_v57 = vpack.c.bf16 %v365_v53, %v364_v52  ;;  %v371_v60 = vpack.c.bf16 %v367_v59, %v366_v58 }
  0x1c   : > { %848 = vmatprep.mubr.bf16.mxu0 %v368_v31  ;;  %843 = vmatpush3.bf16.msra.mxu0 %v905_v28 }
  0x1d   : > { %844 = vmatprep.subr.bf16.mxu0 %v906_v39 }
  0x20   : > { %845 = vmatpush3.bf16.msra.mxu0 %v906_v39 }
  0x21   : > { %846 = vmatprep.subr.bf16.mxu0 %v907_v47 }
  0x24   : > { %847 = vmatpush3.bf16.msra.mxu0 %v907_v47 }
  0x27   : > { %849 = vmatmul.mubr.bf16.vlgmr.msra.gmra.mrb[0].mxu0 %v369_v54 }
  0x28   : > { %852 = vmatprep.mubr.bf16.mxu0 %v370_v57 }
  0x2f   : > { %853 = vmatmul.mubr.bf16.gmra.mrb[4].mxu0 %v371_v60 }
  0xe1   : > { %v862_v61 = vpop.f32.mrb[0].mxu1 }
  0xe2   : > { %v602_v62 = vpop.f32.mrb[1].mxu1 }
  0xe5   : > { %v865_v63 = vpop.f32.mrb[2].mxu1 }
  0xe6   : > { %v612_v0 = vpop.f32.mrb[3].mxu1 }
  0xe9   : > { %v868_v1 = vpop.f32.mrb[4].mxu1 }
  0xea   : > { %v622_v2 = vpop.f32.mrb[5].mxu1 }
  0xed   : > { %v871_v3 = vpop.f32.mrb[6].mxu1 }
  0xee   : > { %v632_v4 = vpop.f32.mrb[7].mxu1 }
  0xfa   : > { %v850_v5 = vpop.f32.mrb[0].mxu0 }
  0xfb   : > { %v643_v6 = vsub.f32 %v850_v5, %v612_v0  ;;  %v470_v7 = vpop.f32.mrb[1].mxu0 }
  0xfc   : > { %v641_v8 = vsub.f32 %v470_v7, %v602_v62  ;;  %v851_v9 = vpop.f32.mrb[2].mxu0 }
  0xfd   : > { %651 = vst [vmem:[%s311_s8 + $0x10] sm:$0xff] %v643_v6  ;;  %v644_v10 = vsub.f32 %v851_v9, %v865_v63  ;;  %v473_v11 = vpop.f32.mrb[3].mxu0 }
  0xfe   : > { %649 = vst [vmem:[%s311_s8] sm:$0xff] %v641_v8  ;;  %v642_v12 = vsub.f32 %v473_v11, %v862_v61 }
  0xff   : > { %652 = vst [vmem:[%s311_s8 + $0x18] sm:$0xff] %v644_v10 }
 0x100   : > { %650 = vst [vmem:[%s311_s8 + $0x8] sm:$0xff] %v642_v12 }
 0x102   : > { %v854_v13 = vpop.f32.mrb[4].mxu0 }
 0x103   : > { %v647_v14 = vsub.f32 %v854_v13, %v632_v4  ;;  %v486_v15 = vpop.f32.mrb[5].mxu0 }
 0x104   : > { %v645_v16 = vsub.f32 %v486_v15, %v622_v2  ;;  %v855_v17 = vpop.f32.mrb[6].mxu0 }
 0x105   : > { %655 = vst [vmem:[%s311_s8 + $0x30] sm:$0xff] %v647_v14  ;;  %v648_v18 = vsub.f32 %v855_v17, %v871_v3  ;;  %v489_v19 = vpop.f32.mrb[7].mxu0 }
 0x106   : > { %653 = vst [vmem:[%s311_s8 + $0x20] sm:$0xff] %v645_v16  ;;  %v646_v20 = vsub.f32 %v489_v19, %v868_v1 }
 0x107   : > { %656 = vst [vmem:[%s311_s8 + $0x38] sm:$0xff] %v648_v18 }
 0x108   : > { %654 = vst [vmem:[%s311_s8 + $0x28] sm:$0xff] %v646_v20 }
 0x109 PF: > { %s16_s23 = sadd.s32 1, %s930_s23   ;;  %s1085_s21 = smov %s926_s22 }
 0x10a   : > { %p13_p5 = scmp.ge.s32.totalorder %s16_s23, 4   ;;  %s1086_s22 = smov %s1088_s24 }
 0x10c   :  { %15 = sbr.rel (!%p13_p5) target bundleno = 2 (0x2), region = 77 }

</bundles_post_ra>
